<compile_context>
chip_gen: v7x
topology: tpu7x:2x2x1
jax: 0.10.0
libtpu: 0.0.40
codegen_flags: <defaults>
</compile_context>

<pallas_src>
import functools

import jax
import jax.numpy as jnp
from jax.experimental import pallas as pl
from jax.experimental.pallas import tpu as pltpu

PADDING_TOKEN = -100.0
_LANES = 128
_SUBLANES = 8


def _cdiv(a, b):
    return (a + b - 1) // b


def _default_num_cores():
    """TensorCores a single Pallas call can shard a 'parallel' axis across."""
    try:
        kind = jax.devices()[0].device_kind.lower()
    except Exception:
        return 1
    if any(tag in kind for tag in ("lite", "v5e", "v6e", "v2", "v3")):
        return 1  # single-TensorCore chips: avoid a fake serial split
    if any(tag in kind for tag in ("v4", "v5p", "v7", "v5")):
        return 2  # megacore / multi-TC parts
    return 1


def _masked_sse_kernel(pred_ref, tgt_ref, acc_ref, *, rows_valid, tile_r):
    """Accumulate masked SSE of one (tile_r, 128) tile into an (8, 128) block."""
    c = pl.program_id(0)
    t = pl.program_id(1)

    @pl.when(t == 0)
    def _():
        acc_ref[...] = jnp.zeros_like(acc_ref)

    # Upcast in-kernel; HBM traffic stays at the input dtype width.
    pred = pred_ref[...].astype(jnp.float32)          # (tile_r, 128)
    tgt = tgt_ref[...].astype(jnp.float32)            # (tile_r, 128)

    # Unclamped global row offset of this tile.  Rows at or beyond
    # `rows_valid` (partial / over-covering tiles) hold garbage -> mask out.
    row0 = (c * pl.num_programs(1) + t) * tile_r
    row_idx = jax.lax.broadcasted_iota(jnp.int32, (tile_r, _LANES), 0) + row0
    valid = (row_idx < rows_valid) & (tgt != PADDING_TOKEN)

    # jnp.where (not mask-multiply) so NaN/Inf garbage in masked lanes cannot
    # propagate into the sum.
    diff = jnp.where(valid, pred - tgt, 0.0)
    sq = diff * diff

    if tile_r % _SUBLANES == 0:
        # Fold into the vreg-shaped accumulator with elementwise (VPU) adds;
        # the lone cross-lane reduction happens in the wrapper.
        acc_ref[...] += jnp.sum(sq.reshape(-1, _SUBLANES, _LANES), axis=0)
    else:
        # Tiny full-array block (< 8 rows): fold everything into sublane 0.
        row_sum = jnp.sum(sq, axis=0, keepdims=True)                 # (1, 128)
        sub = jax.lax.broadcasted_iota(jnp.int32, (_SUBLANES, _LANES), 0)
        acc_ref[...] += jnp.where(
            sub == 0, jnp.broadcast_to(row_sum, (_SUBLANES, _LANES)), 0.0)


def mtrnn_loss(output, target, *, max_tile_rows=8192, num_cores=None):
    """MTRNNLoss.forward: masked sum-of-squared-error / target.shape[2]."""
    assert output.shape == target.shape
    B, T, D = target.shape
    n_elems = B * T * D

    if num_cores is None:
        num_cores = _default_num_cores()

    rem = n_elems % _LANES
    n_main = n_elems - rem
    rows_valid = n_main // _LANES

    sse = jnp.float32(0.0)

    if rows_valid > 0:
        if rem == 0:
            pred2 = output.reshape(rows_valid, _LANES)   # zero-copy reshape
            tgt2 = target.reshape(rows_valid, _LANES)
        else:
            # TODO(synk): this prefix slice may copy the main body; only hit
            # when B*T*D is not a multiple of 128.
            pred2 = jax.lax.slice(output.reshape(-1), (0,), (n_main,))
            pred2 = pred2.reshape(rows_valid, _LANES)
            tgt2 = jax.lax.slice(target.reshape(-1), (0,), (n_main,))
            tgt2 = tgt2.reshape(rows_valid, _LANES)

        itemsize = output.dtype.itemsize + target.dtype.itemsize
        # Sublane packing requirement: 8 for f32, 16 for bf16, 32 for int8/fp8.
        pack = max(8, 32 // output.dtype.itemsize, 32 // target.dtype.itemsize)

        if rows_valid < pack:
            tile_r = rows_valid        # block == full (tiny) array extent
            num_cores = 1
        else:
            tile_r = min(max_tile_rows, _cdiv(rows_valid, num_cores))
            tile_r = max(pack, (tile_r // pack) * pack)
            # Keep 2 inputs x 2 pipeline buffers of tiles <= ~32 MiB of VMEM
            # (v7x only has 64 MiB physical).
            cap = max(pack, ((16 << 20) // (_LANES * itemsize)) // pack * pack)
            tile_r = min(tile_r, cap)

        tiles_total = _cdiv(rows_valid, tile_r)
        num_cores = max(1, min(num_cores, tiles_total))
        num_tiles = _cdiv(tiles_total, num_cores)
        clamp = num_cores * num_tiles > tiles_total

        vmem_limit = int(min(48 << 20,
                             max(32 << 20,
                                 2 * tile_r * _LANES * itemsize + (2 << 20))))

        def row_map(c, t):
            g = c * num_tiles + t
            if clamp:
                # Over-covering iterations re-read the last real tile (the DMA
                # is skipped when the block index repeats); the kernel masks
                # their rows via the unclamped row offset.
                g = jnp.minimum(g, tiles_total - 1)
            return (g, 0)

        kernel = functools.partial(
            _masked_sse_kernel, rows_valid=rows_valid, tile_r=tile_r)

        partials = pl.pallas_call(
            kernel,
            out_shape=jax.ShapeDtypeStruct(
                (num_cores * _SUBLANES, _LANES), jnp.float32),
            grid_spec=pltpu.PrefetchScalarGridSpec(
                num_scalar_prefetch=0,
                grid=(num_cores, num_tiles),
                in_specs=[
                    pl.BlockSpec((tile_r, _LANES), row_map),
                    pl.BlockSpec((tile_r, _LANES), row_map),
                ],
                # Per-core accumulator block, resident across the reduction axis.
                out_specs=pl.BlockSpec((_SUBLANES, _LANES), lambda c, t: (c, 0)),
            ),
            compiler_params=pltpu.CompilerParams(
                dimension_semantics=("parallel", "arbitrary"),
                vmem_limit_bytes=vmem_limit,
            ),
            cost_estimate=pl.CostEstimate(
                flops=3 * n_main,
                transcendentals=0,
                bytes_accessed=n_main * itemsize
                + num_cores * _SUBLANES * _LANES * 4,
            ),
        )(pred2, tgt2)

        sse = sse + jnp.sum(partials)   # single tiny cross-lane reduce in XLA

    if rem:
        # < 128-element tail: pure JAX, negligible next to the kernel.
        pred_tail = jax.lax.slice(output.reshape(-1), (n_main,), (n_elems,))
        tgt_tail = jax.lax.slice(target.reshape(-1), (n_main,), (n_elems,))
        pred_tail = pred_tail.astype(jnp.float32)
        tgt_tail = tgt_tail.astype(jnp.float32)
        sse = sse + jnp.sum(
            jnp.where(tgt_tail != PADDING_TOKEN,
                      (pred_tail - tgt_tail) ** 2, 0.0))

    # TODO(synk): the module also stashes a 'save'-normalized loss (SSE divided
    # by the non-padded element count) as `self.loss`; that side-effect
    # attribute is not part of the forward return and is not computed here.

    # 'grad'-mode normalization: divide by target.size(2) when nonzero.
    return sse / D if D else sse


def _reference_loss(output, target):
    """Pure-JAX reference mirroring MTRNNLoss.forward."""
    mask = target != PADDING_TOKEN
    diff = (output - target).astype(jnp.float32)
    sse = jnp.sum(jnp.where(mask, diff * diff, 0.0))
    d = target.shape[2]
    return sse / d if d else sse


if __name__ == "__main__":
    key = jax.random.PRNGKey(0)

    def make_case(k, B, T, D, pad_from):
        k1, k2 = jax.random.split(k)
        out = jax.random.normal(k1, (B, T, D), dtype=jnp.float32)
        tgt = jax.random.normal(k2, (B, T, D), dtype=jnp.float32)
        # Simulate padded time steps at the end of the last sequence.
        tgt = tgt.at[-1, pad_from:, :].set(PADDING_TOKEN)
        return out, tgt

    cases = [
        (dict(B=2, T=8, D=16, pad_from=6), {}),                        # tiny (2 rows)
        (dict(B=4, T=64, D=32, pad_from=48), dict(max_tile_rows=32)),  # multi-tile reduction
        (dict(B=2, T=8, D=80, pad_from=5), {}),                        # partial last tile
        (dict(B=3, T=5, D=17, pad_from=3), {}),                        # 128-remainder tail
    ]

    for i, (cfg, kwargs) in enumerate(cases):
        key, sub = jax.random.split(key)
        out, tgt = make_case(sub, cfg["B"], cfg["T"], cfg["D"], cfg["pad_from"])
        loss = jax.block_until_ready(mtrnn_loss(out, tgt, **kwargs))
        ref = _reference_loss(out, tgt)
        assert jnp.allclose(loss, ref, rtol=1e-5, atol=1e-5), (i, loss, ref)

    print("KERNEL_OK")
</pallas_src>

<mosaic_0001>
module attributes {stable_mosaic.version = 11 : i64} {
  func.func @_masked_sse_kernel(%arg0: i32, %arg1: i32, %arg2: memref<2x128xf32, #tpu.memory_space<vmem>>, %arg3: memref<2x128xf32, #tpu.memory_space<vmem>>, %arg4: memref<8x128xf32, #tpu.memory_space<vmem>>) attributes {dimension_semantics = [#tpu.dimension_semantics<parallel>, #tpu.dimension_semantics<arbitrary>], iteration_bounds = array<i64: 1, 1>, scalar_prefetch = 0 : i64, scratch_operands = 0 : i64, tpu.core_type = #tpu.core_type<tc>, window_params = [{transform_indices = @transform_0, window_bounds = array<i64: 2, 128>}, {transform_indices = @transform_1, window_bounds = array<i64: 2, 128>}, {transform_indices = @transform_2, window_bounds = array<i64: 8, 128>}]} {
    %c0_i32 = arith.constant 0 : i32
    %0 = arith.cmpi eq, %arg1, %c0_i32 : i32
    %1 = arith.extui %0 : i1 to i32
    %c0_i32_0 = arith.constant 0 : i32
    %2 = arith.cmpi ne, %1, %c0_i32_0 : i32
    scf.if %2 {
      %cst_13 = arith.constant 0.000000e+00 : f32
      %32 = vector.broadcast %cst_13 : f32 to vector<8x128xf32>
      %c0_14 = arith.constant 0 : index
      %c0_15 = arith.constant 0 : index
      %33 = vector.load %arg4[%c0_14, %c0_15] : memref<8x128xf32, #tpu.memory_space<vmem>>, vector<8x128xf32>
      tpu.vector_store %arg4[%c0_14, %c0_15], %32 {strides = array<i32>} : memref<8x128xf32, #tpu.memory_space<vmem>>, vector<8x128xf32>,
    } else {
    }
    %c0 = arith.constant 0 : index
    %c0_1 = arith.constant 0 : index
    %3 = vector.load %arg2[%c0, %c0_1] : memref<2x128xf32, #tpu.memory_space<vmem>>, vector<2x128xf32>
    %c0_2 = arith.constant 0 : index
    %c0_3 = arith.constant 0 : index
    %4 = vector.load %arg3[%c0_2, %c0_3] : memref<2x128xf32, #tpu.memory_space<vmem>>, vector<2x128xf32>
    %c1_i32 = arith.constant 1 : i32
    %5 = arith.muli %arg0, %c1_i32 : i32
    %6 = arith.addi %5, %arg1 : i32
    %c2_i32 = arith.constant 2 : i32
    %7 = arith.muli %6, %c2_i32 : i32
    %8 = tpu.iota {dimensions = array<i32: 0>} : vector<2x128xi32>
    %9 = vector.broadcast %7 : i32 to vector<2x128xi32>
    %10 = arith.addi %8, %9 : vector<2x128xi32>
    %c2_i32_4 = arith.constant 2 : i32
    %11 = vector.broadcast %c2_i32_4 : i32 to vector<2x128xi32>
    %12 = arith.cmpi slt, %10, %11 : vector<2x128xi32>
    %cst = arith.constant -1.000000e+02 : f32
    %13 = vector.broadcast %cst : f32 to vector<2x128xf32>
    %14 = arith.cmpf one, %4, %13 : vector<2x128xf32>
    %15 = arith.andi %12, %14 : vector<2x128xi1>
    %16 = arith.subf %3, %4 : vector<2x128xf32>
    %cst_5 = arith.constant 0.000000e+00 : f32
    %17 = vector.broadcast %cst_5 : f32 to vector<2x128xf32>
    %18 = arith.select %15, %16, %17 : vector<2x128xi1>, vector<2x128xf32>
    %19 = arith.mulf %18, %18 : vector<2x128xf32>
    %cst_6 = arith.constant dense<0.000000e+00> : vector<128xf32>
    %20 = vector.multi_reduction <add>, %19, %cst_6 [0] : vector<2x128xf32> to vector<128xf32>
    %21 = vector.shape_cast %20 : vector<128xf32> to vector<1x128xf32>
    %22 = tpu.iota {dimensions = array<i32: 0>} : vector<8x128xi32>
    %c0_7 = arith.constant 0 : index
    %c0_8 = arith.constant 0 : index
    %23 = vector.load %arg4[%c0_7, %c0_8] : memref<8x128xf32, #tpu.memory_space<vmem>>, vector<8x128xf32>
    %c0_i32_9 = arith.constant 0 : i32
    %24 = vector.broadcast %c0_i32_9 : i32 to vector<8x128xi32>
    %25 = arith.cmpi eq, %22, %24 : vector<8x128xi32>
    %26 = vector.shape_cast %21 : vector<1x128xf32> to vector<1x128xf32>
    %27 = vector.broadcast %26 : vector<1x128xf32> to vector<8x128xf32>
    %cst_10 = arith.constant 0.000000e+00 : f32
    %28 = vector.broadcast %cst_10 : f32 to vector<8x128xf32>
    %29 = arith.select %25, %27, %28 : vector<8x128xi1>, vector<8x128xf32>
    %30 = arith.addf %23, %29 : vector<8x128xf32>
    %c0_11 = arith.constant 0 : index
    %c0_12 = arith.constant 0 : index
    %31 = vector.load %arg4[%c0_11, %c0_12] : memref<8x128xf32, #tpu.memory_space<vmem>>, vector<8x128xf32>
    tpu.vector_store %arg4[%c0_11, %c0_12], %30 {strides = array<i32>} : memref<8x128xf32, #tpu.memory_space<vmem>>, vector<8x128xf32>,
    return
  }
  func.func @transform_0(%arg0: i32, %arg1: i32) -> (i32, i32) {
    %c1_i32 = arith.constant 1 : i32
    %0 = arith.muli %arg0, %c1_i32 : i32
    %1 = arith.addi %0, %arg1 : i32
    %c0_i32 = arith.constant 0 : i32
    %c0_i32_0 = arith.constant 0 : i32
    return %1, %c0_i32 : i32, i32
  }
  func.func @transform_1(%arg0: i32, %arg1: i32) -> (i32, i32) {
    %c1_i32 = arith.constant 1 : i32
    %0 = arith.muli %arg0, %c1_i32 : i32
    %1 = arith.addi %0, %arg1 : i32
    %c0_i32 = arith.constant 0 : i32
    %c0_i32_0 = arith.constant 0 : i32
    return %1, %c0_i32 : i32, i32
  }
  func.func @transform_2(%arg0: i32, %arg1: i32) -> (i32, i32) {
    %c0_i32 = arith.constant 0 : i32
    %c0_i32_0 = arith.constant 0 : i32
    return %arg0, %c0_i32 : i32, i32
  }
}

</mosaic_0001>

<bundles_post_ra>
// kernel: tpu_custom_call.1
= control target key start
LH: loop header
LB: loop body
LE: loop exit
PB: predicated region body
PF: predicated region fallthrough
CT: control target
= control target key end

     0   :  { %7 = vsyncpa [#allocation3], 0  ;;  %s193_s0 = inlined_call_operand.hbm [shape: f32[2,128], index: 0, kind: input, shape index: {}]   ;;  %s194_s1 = inlined_call_operand.vmem [shape: f32[2,128], index: 1, kind: input, shape index: {}]   ;;  %s195_s2 = inlined_call_operand.hbm [shape: f32[8,128], index: 2, kind: output, shape index: {}]  }
   0x1   :  { %8 = vsyncpa [#allocation4], 0  ;;  %s149_s9 = smov [#allocation2]   ;;  %s101_s13 = scalar_lea.hbm %s193_s0, 32 }
   0x2   :  { %s18_s10 = sshll.u32 %s149_s9, 4  ;;  %p102_p0 = scmp.ne.s32.totalorder %s193_s0, %s101_s13  ;;  %s19_s10 = int_to_ptr.vmem [resolvable:$true] %s18_s10 }
   0x3   :  { %p105_p1 = scmp.lt.u32.totalorder %s101_s13, %s193_s0 }
   0x5   :  { %p107_p2 = pnand %p105_p1, %p102_p0 }
   0x7   :  { %110 = shalt.err (!%p107_p2)
}
   0x8   :  { %s111_s18 = scalar_lea.vmem %s19_s10, 32  ;;  %p116_p4 = scmp.lt.s32.totalorder %s19_s10, %s19_s10 }
   0x9   :  { %p112_p3 = scmp.ne.s32.totalorder %s19_s10, %s111_s18  ;;  %p117_p5 = scmp.lt.s32.totalorder %s111_s18, %s111_s18 }
   0xb   :  { %p118_p6 = por %p117_p5, %p116_p4 }
   0xd   :  { %p119_p7 = pnand %p118_p6, %p112_p3 }
   0xf   :  { %122 = shalt.err (!%p119_p7)
}
  0x10   :  { %21 = dma.hbm_to_vmem [thread:$0]  %s193_s0, 32, %s19_s10, [#allocation3]  }
  0x11   :  { %145 = dma.done.wait [#allocation3], 32  }
  0x12   :  { %146 = vsyncadd [#allocation3], 4294967264  ;;  %v54_v0 = vlaneseq  ;;  %v50_v2 = vld [vmem:[#allocation2] sm:$0x3]  ;;  %vm64_vm3 = vcmask 1041408   ;;  %s150_s0 = smov [#allocation5]  }
  0x13   :  { %v51_v3 = vld [vmem:[%s194_s1] sm:$0x3]  ;;  %s83_s23 = sshll.u32 %s150_s0, 4  ;;  %s84_s23 = int_to_ptr.vmem [resolvable:$true] %s83_s23 }
  0x14   :  { %v55_v1 = vshrl.u32 %v54_v0, 7  ;;  %vm59_vm1 = vcmp.ne.f32.partialorder %v51_v3, -100.0  ;;  %v61_v4 = vsub.f32 %v50_v2, %v51_v3  ;;  %s123_s1 = scalar_lea.vmem %s84_s23, 128  ;;  %p128_p9 = scmp.lt.s32.totalorder %s84_s23, %s84_s23 }
  0x15   :  { %p124_p8 = scmp.ne.s32.totalorder %s84_s23, %s123_s1  ;;  %p129_p10 = scmp.lt.s32.totalorder %s123_s1, %s123_s1 }
  0x16   :  { %vm58_vm0 = vcmp.lt.s32.totalorder %v55_v1, 2  ;;  %vm73_vm4 = vcmp.eq.s32.totalorder %v55_v1, 0 }
  0x17   :  { %vm60_vm2 = vmand %vm58_vm0, %vm59_vm1  ;;  %p130_p11 = por %p129_p10, %p128_p9 }
  0x18   :  { %v62_v5 = vsel %vm60_vm2, %v61_v4, 0.0 }
  0x19   :  { %v63_v6 = vmul.f32 %v62_v5, %v62_v5  ;;  %p131_p12 = pnand %p130_p11, %p124_p8 }
  0x1b   :  { %v65_v7 = vsel %vm64_vm3, %v63_v6, 0.0 }
  0x1c   :  { %v66_v8 = vrot.slane %v65_v7, 4 }
  0x1e   :  { %v67_v9 = vadd.f32 %v66_v8, %v65_v7 }
  0x20   :  { %v68_v10 = vrot.slane %v67_v9, 2 }
  0x22   :  { %v69_v11 = vadd.f32 %v68_v10, %v67_v9 }
  0x24   :  { %v70_v12 = vrot.slane %v69_v11, 1 }
  0x26   :  { %v71_v13 = vadd.f32 %v70_v12, %v69_v11 }
  0x28   :  { %v74_v14 = vsel %vm73_vm4, %v71_v13, 0.0 }
  0x29   :  { %76 = vst [vmem:[#allocation5] sm:$0xff] %v74_v14 }
  0x2a   :  { %134 = shalt.err (!%p131_p12)
}
  0x2b   :  { %s135_s26 = scalar_lea.hbm %s195_s2, 128 }
  0x2c   :  { %p136_p13 = scmp.ne.s32.totalorder %s195_s2, %s135_s26  ;;  %p139_p0 = scmp.lt.u32.totalorder %s135_s26, %s195_s2 }
  0x2e   :  { %p141_p1 = pnand %p139_p0, %p136_p13 }
  0x30   :  { %144 = shalt.err (!%p141_p1)
}
  0x31   :  { %86 = dma.vmem_to_hbm [thread:$0]  %s84_s23, 128, %s195_s2, [#allocation4]  }
  0x32   :  { %147 = dma.done.wait [#allocation4], 128  }
  0x33   :  { %148 = vsyncadd [#allocation4], 4294967168 }
  0x34   :  { %90 = vsyncpa [#allocation3], 1 }
  0x35   :  { %91 = vsyncpa [#allocation4], 1 }

</bundles_post_ra>
